<compile_context>
chip_gen: v7x
topology: tpu7x:2x2x1
jax: 0.10.0
libtpu: 0.0.40
codegen_flags: <defaults>
</compile_context>

<pallas_src>
import functools
import math

import jax
import jax.numpy as jnp
from jax.experimental import pallas as pl
from jax.experimental.pallas import tpu as pltpu

LN_EPS = 1e-5


def _round_up(a, b):
    return ((a + b - 1) // b) * b


def _gelu_exact(x):
    # nn.GELU() default = exact erf-based GELU (computed in f32)
    return 0.5 * x * (1.0 + jax.lax.erf(x / jnp.sqrt(jnp.float32(2.0))))


def _masked_ln_gelu(h, gamma, beta, mask, inv_p):
    """LayerNorm over the true (unpadded) last-dim size, then GELU.

    h: (TM, Pp) f32 with padded lanes exactly zero.
    gamma/beta: (1, Pp) f32 with zero padding -> padded lanes of the result are 0.
    """
    mean = jnp.sum(h * mask, axis=-1, keepdims=True) * inv_p
    d = (h - mean) * mask
    var = jnp.sum(d * d, axis=-1, keepdims=True) * inv_p
    hn = d * jax.lax.rsqrt(var + LN_EPS) * gamma + beta
    return _gelu_exact(hn)


def seq2pre_kernel(x_ref, w1t_ref, w2t_ref, vec_ref, o_ref, *, true_p):
    # x_ref:   (TM, S)        activations (row tile of flattened B*N)
    # w1t_ref: (S,  Pp)       Linear1 weight, pre-transposed + lane-padded
    # w2t_ref: (Pp, Pp)       Linear2 weight, pre-transposed + lane-padded
    # vec_ref: (8,  Pp)       rows: [b1, b2, gamma, beta, 0, 0, 0, 0]
    # o_ref:   (TM, Pp)       lane-dense output tile
    x = x_ref[...]
    w1t = w1t_ref[...]
    w2t = w2t_ref[...]
    vec = vec_ref[...]                      # (8, Pp) f32
    b1 = vec[0:1, :]
    b2 = vec[1:2, :]
    gamma = vec[2:3, :]
    beta = vec[3:4, :]

    pp = o_ref.shape[-1]
    lane = jax.lax.broadcasted_iota(jnp.int32, (1, pp), 1)
    mask = (lane < true_p).astype(jnp.float32)          # (1, Pp)
    inv_p = jnp.float32(1.0 / true_p)

    # x = act(norm(Linear1(x)))   -- f32 accumulation on the MXU
    h1 = jnp.dot(x, w1t, preferred_element_type=jnp.float32) + b1     # (TM, Pp)
    y = _masked_ln_gelu(h1, gamma, beta, mask, inv_p)                  # f32

    # x = act(norm(Linear2(x)))
    h2 = jnp.dot(y.astype(w2t.dtype), w2t,
                 preferred_element_type=jnp.float32) + b2              # (TM, Pp)
    z = _masked_ln_gelu(h2, gamma, beta, mask, inv_p)

    o_ref[...] = z.astype(o_ref.dtype)


def seq2pre_forward(x, params):
    """x: (B, N, seq_len) -> (B, pred_len, N), matching the PyTorch module."""
    B, N, S = x.shape
    P = params["w1"].shape[0]
    dt = x.dtype
    itemsize = jnp.dtype(dt).itemsize

    # --- padded / tiled geometry -------------------------------------------
    Pp = _round_up(P, 128)                  # lane-dense output width
    R = B * N                               # flattened rows
    TM = 512 if R >= 512 else _round_up(R, 8)
    Rp = _round_up(R, TM)

    # --- wrapper-side data prep (one-time, HBM-level) -----------------------
    x2 = x.reshape(R, S)
    if Rp != R:
        x2 = jnp.pad(x2, ((0, Rp - R), (0, 0)))

    w1t = jnp.zeros((S, Pp), dt).at[:, :P].set(params["w1"].T.astype(dt))
    w2t = jnp.zeros((Pp, Pp), dt).at[:P, :P].set(params["w2"].T.astype(dt))

    vecs = jnp.zeros((8, Pp), jnp.float32)
    vecs = vecs.at[0, :P].set(params["b1"].astype(jnp.float32))
    vecs = vecs.at[1, :P].set(params["b2"].astype(jnp.float32))
    vecs = vecs.at[2, :P].set(params["gamma"].astype(jnp.float32))
    vecs = vecs.at[3, :P].set(params["beta"].astype(jnp.float32))

    grid = (Rp // TM,)

    # --- VMEM budget (double-buffered activation/output + resident weights) --
    blk_bytes = (2 * TM * S * itemsize        # x tile
                 + 2 * TM * Pp * itemsize     # out tile
                 + 2 * S * Pp * itemsize      # w1t
                 + 2 * Pp * Pp * itemsize     # w2t
                 + 2 * 8 * Pp * 4)            # packed bias/LN vectors
    vmem_limit = min(64 * 1024 * 1024, max(8 * 1024 * 1024, 6 * blk_bytes))

    cost = pl.CostEstimate(
        flops=2 * R * P * (S + P),
        transcendentals=2 * R * P,
        bytes_accessed=(R * S + S * P + P * P + 4 * P) * itemsize
        + R * P * itemsize,
    )

    out = pl.pallas_call(
        functools.partial(seq2pre_kernel, true_p=P),
        out_shape=jax.ShapeDtypeStruct((Rp, Pp), dt),
        grid_spec=pltpu.PrefetchScalarGridSpec(
            num_scalar_prefetch=0,
            grid=grid,
            in_specs=[
                pl.BlockSpec((TM, S), lambda i: (i, 0)),    # activation row tile
                pl.BlockSpec((S, Pp), lambda i: (0, 0)),    # W1^T (resident)
                pl.BlockSpec((Pp, Pp), lambda i: (0, 0)),   # W2^T (resident)
                pl.BlockSpec((8, Pp), lambda i: (0, 0)),    # packed b1/b2/gamma/beta
            ],
            out_specs=pl.BlockSpec((TM, Pp), lambda i: (i, 0)),
        ),
        compiler_params=pltpu.CompilerParams(
            dimension_semantics=("parallel",),
            vmem_limit_bytes=vmem_limit,
        ),
        cost_estimate=cost,
    )(x2, w1t, w2t, vecs)

    out = out[:R, :P].reshape(B, N, P)
    # .transpose(1, 2) of the PyTorch module (small output; see TODO above)
    return jnp.transpose(out, (0, 2, 1))


def init_params(key, seq_len, pred_len):
    """Deterministic init mirroring nn.Linear / nn.LayerNorm defaults."""
    k1, k2, k3, k4 = jax.random.split(key, 4)
    bound1 = 1.0 / math.sqrt(seq_len)
    bound2 = 1.0 / math.sqrt(pred_len)
    return {
        "w1": jax.random.uniform(k1, (pred_len, seq_len), jnp.float32, -bound1, bound1),
        "b1": jax.random.uniform(k2, (pred_len,), jnp.float32, -bound1, bound1),
        "w2": jax.random.uniform(k3, (pred_len, pred_len), jnp.float32, -bound2, bound2),
        "b2": jax.random.uniform(k4, (pred_len,), jnp.float32, -bound2, bound2),
        # self.norm (shared by both LayerNorm applications; normc is unused)
        "gamma": jnp.ones((pred_len,), jnp.float32),
        "beta": jnp.zeros((pred_len,), jnp.float32),
    }


def _reference(x, p):
    def ln(h):
        m = jnp.mean(h, -1, keepdims=True)
        v = jnp.mean((h - m) ** 2, -1, keepdims=True)
        return (h - m) / jnp.sqrt(v + LN_EPS) * p["gamma"] + p["beta"]

    h = _gelu_exact(ln(x @ p["w1"].T + p["b1"]))
    h = _gelu_exact(ln(h @ p["w2"].T + p["b2"]))
    return jnp.transpose(h, (0, 2, 1))


if __name__ == "__main__":
    # Small shapes consistent with the module: seq_len=16, pred_len=8,
    # batch=2, channels (second axis of x) = 4.
    seq_len, pred_len = 16, 8
    B, N = 2, 4

    key = jax.random.PRNGKey(0)
    kx, kp = jax.random.split(key)
    x = jax.random.normal(kx, (B, N, seq_len), jnp.float32)
    params = init_params(kp, seq_len, pred_len)

    out = seq2pre_forward(x, params)
    out = jax.block_until_ready(out)

    ref = _reference(x, params)
    assert out.shape == (B, pred_len, N), out.shape
    assert jnp.allclose(out, ref, atol=1e-5, rtol=1e-5), float(
        jnp.max(jnp.abs(out - ref)))

    print("KERNEL_OK")
</pallas_src>

<mosaic_0001>
module attributes {stable_mosaic.version = 11 : i64} {
  func.func @seq2pre_kernel(%arg0: i32, %arg1: memref<8x16xf32, #tpu.memory_space<vmem>>, %arg2: memref<16x128xf32, #tpu.memory_space<vmem>>, %arg3: memref<128x128xf32, #tpu.memory_space<vmem>>, %arg4: memref<8x128xf32, #tpu.memory_space<vmem>>, %arg5: memref<8x128xf32, #tpu.memory_space<vmem>>) attributes {dimension_semantics = [#tpu.dimension_semantics<parallel>], iteration_bounds = array<i64: 1>, scalar_prefetch = 0 : i64, scratch_operands = 0 : i64, tpu.core_type = #tpu.core_type<tc>, window_params = [{transform_indices = @transform_0, window_bounds = array<i64: 8, 16>}, {pipeline_mode = #tpu.pipeline_mode<synchronous>, transform_indices = @transform_1, window_bounds = array<i64: 16, 128>}, {pipeline_mode = #tpu.pipeline_mode<synchronous>, transform_indices = @transform_2, window_bounds = array<i64: 128, 128>}, {pipeline_mode = #tpu.pipeline_mode<synchronous>, transform_indices = @transform_3, window_bounds = array<i64: 8, 128>}, {transform_indices = @transform_4, window_bounds = array<i64: 8, 128>}]} {
    %c0 = arith.constant 0 : index
    %c0_0 = arith.constant 0 : index
    %0 = vector.load %arg1[%c0, %c0_0] : memref<8x16xf32, #tpu.memory_space<vmem>>, vector<8x16xf32>
    %c0_1 = arith.constant 0 : index
    %c0_2 = arith.constant 0 : index
    %1 = vector.load %arg2[%c0_1, %c0_2] : memref<16x128xf32, #tpu.memory_space<vmem>>, vector<16x128xf32>
    %c0_3 = arith.constant 0 : index
    %c0_4 = arith.constant 0 : index
    %2 = vector.load %arg3[%c0_3, %c0_4] : memref<128x128xf32, #tpu.memory_space<vmem>>, vector<128x128xf32>
    %c0_5 = arith.constant 0 : index
    %c0_6 = arith.constant 0 : index
    %3 = vector.load %arg4[%c0_5, %c0_6] : memref<8x128xf32, #tpu.memory_space<vmem>>, vector<8x128xf32>
    %4 = vector.extract_strided_slice %3 {offsets = [0, 0], sizes = [1, 128], strides = [1, 1]} : vector<8x128xf32> to vector<1x128xf32>
    %5 = vector.extract_strided_slice %3 {offsets = [1, 0], sizes = [1, 128], strides = [1, 1]} : vector<8x128xf32> to vector<1x128xf32>
    %6 = vector.extract_strided_slice %3 {offsets = [2, 0], sizes = [1, 128], strides = [1, 1]} : vector<8x128xf32> to vector<1x128xf32>
    %7 = vector.extract_strided_slice %3 {offsets = [3, 0], sizes = [1, 128], strides = [1, 1]} : vector<8x128xf32> to vector<1x128xf32>
    %8 = tpu.iota {dimensions = array<i32: 1>} : vector<1x128xi32>
    %c8_i32 = arith.constant 8 : i32
    %9 = vector.broadcast %c8_i32 : i32 to vector<1x128xi32>
    %10 = arith.cmpi slt, %8, %9 : vector<1x128xi32>
    %11 = arith.extui %10 : vector<1x128xi1> to vector<1x128xi32>
    %12 = arith.sitofp %11 : vector<1x128xi32> to vector<1x128xf32>
    %cst = arith.constant dense<0.000000e+00> : vector<8x128xf32>
    %13 = tpu.matmul %0, %1, %cst {dimension_numbers = #tpu.dot_dimension_numbers<[1], [0], [0], [1], [0, 0, 1, 1], [], []>} : vector<8x16xf32>, vector<16x128xf32>, vector<8x128xf32> -> vector<8x128xf32>
    %14 = vector.broadcast %4 : vector<1x128xf32> to vector<8x128xf32>
    %15 = arith.addf %13, %14 : vector<8x128xf32>
    %16 = vector.broadcast %12 : vector<1x128xf32> to vector<8x128xf32>
    %17 = arith.mulf %15, %16 : vector<8x128xf32>
    %cst_7 = arith.constant dense<0.000000e+00> : vector<8xf32>
    %18 = vector.multi_reduction <add>, %17, %cst_7 [1] : vector<8x128xf32> to vector<8xf32>
    %19 = vector.shape_cast %18 : vector<8xf32> to vector<8x1xf32>
    %cst_8 = arith.constant 1.250000e-01 : f32
    %20 = vector.broadcast %cst_8 : f32 to vector<8x1xf32>
    %21 = arith.mulf %19, %20 : vector<8x1xf32>
    %22 = vector.broadcast %21 : vector<8x1xf32> to vector<8x128xf32>
    %23 = arith.subf %15, %22 : vector<8x128xf32>
    %24 = vector.broadcast %12 : vector<1x128xf32> to vector<8x128xf32>
    %25 = arith.mulf %23, %24 : vector<8x128xf32>
    %26 = arith.mulf %25, %25 : vector<8x128xf32>
    %cst_9 = arith.constant dense<0.000000e+00> : vector<8xf32>
    %27 = vector.multi_reduction <add>, %26, %cst_9 [1] : vector<8x128xf32> to vector<8xf32>
    %28 = vector.shape_cast %27 : vector<8xf32> to vector<8x1xf32>
    %cst_10 = arith.constant 1.250000e-01 : f32
    %29 = vector.broadcast %cst_10 : f32 to vector<8x1xf32>
    %30 = arith.mulf %28, %29 : vector<8x1xf32>
    %cst_11 = arith.constant 9.99999974E-6 : f32
    %31 = vector.broadcast %cst_11 : f32 to vector<8x1xf32>
    %32 = arith.addf %30, %31 : vector<8x1xf32>
    %33 = math.rsqrt %32 : vector<8x1xf32>
    %34 = vector.broadcast %33 : vector<8x1xf32> to vector<8x128xf32>
    %35 = arith.mulf %25, %34 : vector<8x128xf32>
    %36 = vector.broadcast %6 : vector<1x128xf32> to vector<8x128xf32>
    %37 = arith.mulf %35, %36 : vector<8x128xf32>
    %38 = vector.broadcast %7 : vector<1x128xf32> to vector<8x128xf32>
    %39 = arith.addf %37, %38 : vector<8x128xf32>
    %cst_12 = arith.constant 5.000000e-01 : f32
    %40 = vector.broadcast %cst_12 : f32 to vector<8x128xf32>
    %41 = arith.mulf %40, %39 : vector<8x128xf32>
    %cst_13 = arith.constant 2.000000e+00 : f32
    %42 = math.sqrt %cst_13 : f32
    %43 = vector.broadcast %42 : f32 to vector<8x128xf32>
    %44 = arith.divf %39, %43 : vector<8x128xf32>
    %45 = math.erf %44 : vector<8x128xf32>
    %cst_14 = arith.constant 1.000000e+00 : f32
    %46 = vector.broadcast %cst_14 : f32 to vector<8x128xf32>
    %47 = arith.addf %46, %45 : vector<8x128xf32>
    %48 = arith.mulf %41, %47 : vector<8x128xf32>
    %cst_15 = arith.constant dense<0.000000e+00> : vector<8x128xf32>
    %49 = tpu.matmul %48, %2, %cst_15 {dimension_numbers = #tpu.dot_dimension_numbers<[1], [0], [0], [1], [0, 0, 1, 1], [], []>} : vector<8x128xf32>, vector<128x128xf32>, vector<8x128xf32> -> vector<8x128xf32>
    %50 = vector.broadcast %5 : vector<1x128xf32> to vector<8x128xf32>
    %51 = arith.addf %49, %50 : vector<8x128xf32>
    %52 = vector.broadcast %12 : vector<1x128xf32> to vector<8x128xf32>
    %53 = arith.mulf %51, %52 : vector<8x128xf32>
    %cst_16 = arith.constant dense<0.000000e+00> : vector<8xf32>
    %54 = vector.multi_reduction <add>, %53, %cst_16 [1] : vector<8x128xf32> to vector<8xf32>
    %55 = vector.shape_cast %54 : vector<8xf32> to vector<8x1xf32>
    %cst_17 = arith.constant 1.250000e-01 : f32
    %56 = vector.broadcast %cst_17 : f32 to vector<8x1xf32>
    %57 = arith.mulf %55, %56 : vector<8x1xf32>
    %58 = vector.broadcast %57 : vector<8x1xf32> to vector<8x128xf32>
    %59 = arith.subf %51, %58 : vector<8x128xf32>
    %60 = vector.broadcast %12 : vector<1x128xf32> to vector<8x128xf32>
    %61 = arith.mulf %59, %60 : vector<8x128xf32>
    %62 = arith.mulf %61, %61 : vector<8x128xf32>
    %cst_18 = arith.constant dense<0.000000e+00> : vector<8xf32>
    %63 = vector.multi_reduction <add>, %62, %cst_18 [1] : vector<8x128xf32> to vector<8xf32>
    %64 = vector.shape_cast %63 : vector<8xf32> to vector<8x1xf32>
    %cst_19 = arith.constant 1.250000e-01 : f32
    %65 = vector.broadcast %cst_19 : f32 to vector<8x1xf32>
    %66 = arith.mulf %64, %65 : vector<8x1xf32>
    %cst_20 = arith.constant 9.99999974E-6 : f32
    %67 = vector.broadcast %cst_20 : f32 to vector<8x1xf32>
    %68 = arith.addf %66, %67 : vector<8x1xf32>
    %69 = math.rsqrt %68 : vector<8x1xf32>
    %70 = vector.broadcast %69 : vector<8x1xf32> to vector<8x128xf32>
    %71 = arith.mulf %61, %70 : vector<8x128xf32>
    %72 = vector.broadcast %6 : vector<1x128xf32> to vector<8x128xf32>
    %73 = arith.mulf %71, %72 : vector<8x128xf32>
    %74 = vector.broadcast %7 : vector<1x128xf32> to vector<8x128xf32>
    %75 = arith.addf %73, %74 : vector<8x128xf32>
    %cst_21 = arith.constant 5.000000e-01 : f32
    %76 = vector.broadcast %cst_21 : f32 to vector<8x128xf32>
    %77 = arith.mulf %76, %75 : vector<8x128xf32>
    %cst_22 = arith.constant 2.000000e+00 : f32
    %78 = math.sqrt %cst_22 : f32
    %79 = vector.broadcast %78 : f32 to vector<8x128xf32>
    %80 = arith.divf %75, %79 : vector<8x128xf32>
    %81 = math.erf %80 : vector<8x128xf32>
    %cst_23 = arith.constant 1.000000e+00 : f32
    %82 = vector.broadcast %cst_23 : f32 to vector<8x128xf32>
    %83 = arith.addf %82, %81 : vector<8x128xf32>
    %84 = arith.mulf %77, %83 : vector<8x128xf32>
    %c0_24 = arith.constant 0 : index
    %c0_25 = arith.constant 0 : index
    %85 = vector.load %arg5[%c0_24, %c0_25] : memref<8x128xf32, #tpu.memory_space<vmem>>, vector<8x128xf32>
    tpu.vector_store %arg5[%c0_24, %c0_25], %84 {strides = array<i32>} : memref<8x128xf32, #tpu.memory_space<vmem>>, vector<8x128xf32>,
    return
  }
  func.func @transform_0(%arg0: i32) -> (i32, i32) {
    %c0_i32 = arith.constant 0 : i32
    %c0_i32_0 = arith.constant 0 : i32
    return %arg0, %c0_i32 : i32, i32
  }
  func.func @transform_1(%arg0: i32) -> (i32, i32) {
    %c0_i32 = arith.constant 0 : i32
    %c0_i32_0 = arith.constant 0 : i32
    %c0_i32_1 = arith.constant 0 : i32
    return %c0_i32, %c0_i32_0 : i32, i32
  }
  func.func @transform_2(%arg0: i32) -> (i32, i32) {
    %c0_i32 = arith.constant 0 : i32
    %c0_i32_0 = arith.constant 0 : i32
    %c0_i32_1 = arith.constant 0 : i32
    return %c0_i32, %c0_i32_0 : i32, i32
  }
  func.func @transform_3(%arg0: i32) -> (i32, i32) {
    %c0_i32 = arith.constant 0 : i32
    %c0_i32_0 = arith.constant 0 : i32
    %c0_i32_1 = arith.constant 0 : i32
    return %c0_i32, %c0_i32_0 : i32, i32
  }
  func.func @transform_4(%arg0: i32) -> (i32, i32) {
    %c0_i32 = arith.constant 0 : i32
    %c0_i32_0 = arith.constant 0 : i32
    return %arg0, %c0_i32 : i32, i32
  }
}

</mosaic_0001>

<bundles_post_ra>
// kernel: tpu_custom_call.1
= control target key start
LH: loop header
LB: loop body
LE: loop exit
PB: predicated region body
PF: predicated region fallthrough
CT: control target
= control target key end

     0   :  { %9 = vsyncpa [#allocation3], 0  ;;  %s620_s0 = inlined_call_operand.hbm [shape: f32[8,16], index: 0, kind: input, shape index: {}]   ;;  %s621_s1 = inlined_call_operand.hbm [shape: f32[16,128], index: 1, kind: input, shape index: {}]   ;;  %s622_s2 = inlined_call_operand.hbm [shape: f32[128,128], index: 2, kind: input, shape index: {}]   ;;  %s623_s3 = inlined_call_operand.vmem [shape: f32[8,128], index: 3, kind: input, shape index: {}]   ;;  %s624_s4 = inlined_call_operand.hbm [shape: f32[8,128], index: 4, kind: output, shape index: {}]  }
   0x1   :  { %10 = vsyncpa [#allocation6], 0 }
   0x2   :  { %11 = vsyncpa [#allocation4], 0  ;;  %s502_s15 = smov [#allocation5]   ;;  %s408_s19 = scalar_lea.hbm %s621_s1, 256 }
   0x3   :  { %s27_s16 = sshll.u32 %s502_s15, 4  ;;  %p409_p0 = scmp.ne.s32.totalorder %s621_s1, %s408_s19  ;;  %s28_s16 = int_to_ptr.vmem [resolvable:$true] %s27_s16 }
   0x4   :  { %p412_p1 = scmp.lt.u32.totalorder %s408_s19, %s621_s1 }
   0x6   :  { %p414_p2 = pnand %p412_p1, %p409_p0 }
   0x8   :  { %417 = shalt.err (!%p414_p2)
}
   0x9   :  { %s418_s24 = scalar_lea.vmem %s28_s16, 256  ;;  %p423_p4 = scmp.lt.s32.totalorder %s28_s16, %s28_s16 }
   0xa   :  { %p419_p3 = scmp.ne.s32.totalorder %s28_s16, %s418_s24  ;;  %p424_p5 = scmp.lt.s32.totalorder %s418_s24, %s418_s24 }
   0xc   :  { %p425_p6 = por %p424_p5, %p423_p4 }
   0xe   :  { %p426_p7 = pnand %p425_p6, %p419_p3 }
  0x10   :  { %429 = shalt.err (!%p426_p7)
}
  0x11   :  { %s503_s25 = smov 128   ;;  %s504_s26 = smov 8  }
  0x12   :  { %33 = dma.hbm_to_vmem [thread:$0]  %s621_s1, 256, %s28_s16, [#allocation6], %s503_s25, %s503_s25, %s504_s26  }
  0x13   :  { %s505_s29 = smov [#allocation2]   ;;  %s506_s5 = smov [#allocation7]  }
  0x14   :  { %s18_s30 = sshll.u32 %s505_s29, 4  ;;  %s39_s6 = sshll.u32 %s506_s5, 4  ;;  %s19_s30 = int_to_ptr.vmem [resolvable:$true] %s18_s30  ;;  %s40_s6 = int_to_ptr.vmem [resolvable:$true] %s39_s6 }
  0x15   :  { %s430_s9 = scalar_lea.hbm %s620_s0, 128 }
  0x16   :  { %p431_p8 = scmp.ne.s32.totalorder %s620_s0, %s430_s9  ;;  %p434_p9 = scmp.lt.u32.totalorder %s430_s9, %s620_s0 }
  0x18   :  { %p436_p10 = pnand %p434_p9, %p431_p8 }
  0x1a   :  { %439 = shalt.err (!%p436_p10)
}
  0x1b   :  { %s440_s1 = scalar_lea.vmem %s19_s30, 128  ;;  %p445_p12 = scmp.lt.s32.totalorder %s19_s30, %s19_s30 }
  0x1c   :  { %p441_p11 = scmp.ne.s32.totalorder %s19_s30, %s440_s1  ;;  %p446_p13 = scmp.lt.s32.totalorder %s440_s1, %s440_s1 }
  0x1e   :  { %p447_p0 = por %p446_p13, %p445_p12 }
  0x20   :  { %p448_p1 = pnand %p447_p0, %p441_p11 }
  0x22   :  { %451 = shalt.err (!%p448_p1)
}
  0x23   :  { %21 = dma.hbm_to_vmem [thread:$0]  %s620_s0, 128, %s19_s30, [#allocation3]  }
  0x24   :  { %s452_s18 = scalar_lea.hbm %s622_s2, 2048 }
  0x25   :  { %p453_p2 = scmp.ne.s32.totalorder %s622_s2, %s452_s18  ;;  %p456_p3 = scmp.lt.u32.totalorder %s452_s18, %s622_s2 }
  0x27   :  { %p458_p4 = pnand %p456_p3, %p453_p2 }
  0x29   :  { %461 = shalt.err (!%p458_p4)
}
  0x2a   :  { %s462_s23 = scalar_lea.vmem %s40_s6, 2048  ;;  %p467_p6 = scmp.lt.s32.totalorder %s40_s6, %s40_s6 }
  0x2b   :  { %p463_p5 = scmp.ne.s32.totalorder %s40_s6, %s462_s23  ;;  %p468_p7 = scmp.lt.s32.totalorder %s462_s23, %s462_s23 }
  0x2d   :  { %p469_p8 = por %p468_p7, %p467_p6 }
  0x2f   :  { %p470_p9 = pnand %p469_p8, %p463_p5 }
  0x31   :  { %473 = shalt.err (!%p470_p9)
}
  0x32   :  { %45 = dma.hbm_to_vmem [thread:$0]  %s622_s2, 2048, %s40_s6, [#allocation6], %s503_s25, %s503_s25, %s504_s26  }
  0x33   :  { %496 = dma.done.wait [#allocation3], 128  }
  0x34   :  { %497 = vsyncadd [#allocation3], 4294967168 }
  0x35   :  { %498 = dma.done.wait [#allocation6], 2304  }
  0x36   :  { %499 = vsyncadd [#allocation6], 4294964992  ;;  %v507_v0 = vmov 0.0|0.0   ;;  %vm508_vm0 = vmmov 0   ;;  %v509_v1 = vmov 0.0   ;;  %v58_v2 = vld [vmem:[#allocation5] sm:$0xff]  ;;  %v77_v6 = vlaneseq }
  0x37   :  { %364 = vmatprep.subr.bf16.mxu0 %v507_v0  ;;  %326 = vmatprep.mubr.msk.f32.mxu0 %vm508_vm0, %v509_v1  ;;  %v59_v3 = vld [vmem:[#allocation5 + $0x8] sm:$0xff]  ;;  %v57_v5 = vld [vmem:[#allocation2] sm:$0xff]  ;;  %vm86_vm1 = vcmask 130048   ;;  %v60_v22 = vld [vmem:[#allocation7] sm:$0xff] }
  0x38   :  { %367 = vmatprep.subr.bf16.mxu1 %v507_v0  ;;  %361 = vmatprep.mubr.msk.f32.mxu1 %vm508_vm0, %v509_v1  ;;  %v365_v4 = vpack.c.bf16 %v59_v3, %v58_v2  ;;  %v580_v7 = vshrl.u32 %v77_v6, 7  ;;  %v78_v9 = vand.u32 127, %v77_v6  ;;  %v586_v10 = vld [vmem:[%s623_s3] sm:$0xff]  ;;  %v62_v25 = vld [vmem:[#allocation7 + $0x10] sm:$0xff]  ;;  %v63_v26 = vld [vmem:[#allocation7 + $0x18] sm:$0xff]  ;;  %s510_s3 = smov [#allocation8]  }
  0x39   :  { %v61_v23 = vld [vmem:[#allocation7 + $0x8] sm:$0xff]  ;;  %v371_v27 = vpack.c.bf16 %v63_v26, %v62_v25  ;;  %v64_v28 = vld [vmem:[#allocation7 + $0x20] sm:$0xff]  ;;  %v66_v31 = vld [vmem:[#allocation7 + $0x30] sm:$0xff]  ;;  %s290_s26 = sshll.u32 %s510_s3, 4  ;;  %s291_s26 = int_to_ptr.vmem [resolvable:$true] %s290_s26 }
  0x3a   :  { %366 = vmatpush3.bf16.msra.mxu0 %v365_v4  ;;  %v84_v8 = vsub.s32 0, %v580_v7  ;;  %vm79_vm2 = vcmp.lt.s32.totalorder %v78_v9, 8  ;;  %v368_v24 = vpack.c.bf16 %v61_v23, %v60_v22  ;;  %v65_v29 = vld [vmem:[#allocation7 + $0x28] sm:$0xff]  ;;  %v67_v32 = vld [vmem:[#allocation7 + $0x38] sm:$0xff]  ;;  %v68_v34 = vld [vmem:[#allocation7 + $0x40] sm:$0xff]  ;;  %v175_v49 = vsub.s32 2, %v580_v7  ;;  %p479_p11 = scmp.lt.s32.totalorder %s291_s26, %s291_s26 }
  0x3b   :  { %v589_v13 = vsel %vm79_vm2, 1.0, %v509_v1  ;;  %v374_v30 = vpack.c.bf16 %v65_v29, %v64_v28  ;;  %v377_v33 = vpack.c.bf16 %v67_v32, %v66_v31  ;;  %v69_v35 = vld [vmem:[#allocation7 + $0x48] sm:$0xff]  ;;  %v70_v37 = vld [vmem:[#allocation7 + $0x50] sm:$0xff]  ;;  %v71_v38 = vld [vmem:[#allocation7 + $0x58] sm:$0xff]  ;;  %v180_v50 = vsub.s32 3, %v580_v7  ;;  %s474_s27 = scalar_lea.vmem %s291_s26, 128 }
  0x3c   :  { %v85_v11 = vrot.slane %v586_v10, %v84_v8  ;;  %369 = vmatpush3.bf16.msra.mxu1 %v368_v24  ;;  %v380_v36 = vpack.c.bf16 %v69_v35, %v68_v34  ;;  %v383_v39 = vpack.c.bf16 %v71_v38, %v70_v37  ;;  %v72_v40 = vld [vmem:[#allocation7 + $0x60] sm:$0xff]  ;;  %v73_v41 = vld [vmem:[#allocation7 + $0x68] sm:$0xff]  ;;  %v74_v43 = vld [vmem:[#allocation7 + $0x70] sm:$0xff]  ;;  %v176_v51 = vrot.slane %v586_v10, %v175_v49  ;;  %p475_p10 = scmp.ne.s32.totalorder %s291_s26, %s474_s27  ;;  %p480_p12 = scmp.lt.s32.totalorder %s474_s27, %s474_s27 }
  0x3d   :  { %327 = vmatmul.mubr.msk.f32.vlgmr.msra.gmra.mrb[0].mxu0 %vm86_vm1, %v57_v5  ;;  %370 = vmatprep.subr.bf16.mxu1 %v507_v0  ;;  %v386_v42 = vpack.c.bf16 %v73_v41, %v72_v40  ;;  %v75_v44 = vld [vmem:[#allocation7 + $0x78] sm:$0xff]  ;;  %v181_v54 = vrot.slane %v586_v10, %v180_v50  ;;  %v191_v62 = vsub.s32 1, %v580_v7 }
  0x3e   :  { %v389_v45 = vpack.c.bf16 %v75_v44, %v74_v43  ;;  %p481_p13 = por %p480_p12, %p479_p11 }
  0x3f   :  { %v192_v63 = vrot.slane %v586_v10, %v191_v62 }
  0x40   :  { %372 = vmatpush3.bf16.msra.mxu1 %v371_v27  ;;  %p482_p0 = pnand %p481_p13, %p475_p10 }
  0x41   :  { %373 = vmatprep.subr.bf16.mxu1 %v507_v0 }
  0x44   :  { %375 = vmatpush3.bf16.msra.mxu1 %v374_v30 }
  0x45   :  { %376 = vmatprep.subr.bf16.mxu1 %v507_v0 }
  0x48   :  { %378 = vmatpush3.bf16.msra.mxu1 %v377_v33 }
  0x49   :  { %379 = vmatprep.subr.bf16.mxu1 %v507_v0 }
  0x4c   :  { %381 = vmatpush3.bf16.msra.mxu1 %v380_v36 }
  0x4d   :  { %382 = vmatprep.subr.bf16.mxu1 %v507_v0 }
  0x50   :  { %384 = vmatpush3.bf16.msra.mxu1 %v383_v39 }
  0x51   :  { %385 = vmatprep.subr.bf16.mxu1 %v507_v0 }
  0x54   :  { %387 = vmatpush3.bf16.msra.mxu1 %v386_v42 }
  0x55   :  { %388 = vmatprep.subr.bf16.mxu1 %v507_v0 }
  0x58   :  { %390 = vmatpush3.bf16.msra.mxu1 %v389_v45 }
 0x110   :  { %v156_v12 = vpop.f32.mrb[0].mxu0 }
 0x111   :  { %v157_v14 = vadd.f32 %v156_v12, %v85_v11  ;;  %v328_v15 = vpop.f32.mrb[1].mxu0 }
 0x113   :  { %v160_v16 = vmul.f32 %v589_v13, %v157_v14 }
 0x115   :  { %161 = vadd.xlane.f32.xlu0 %v160_v16 }
 0x1a2   :  { %v162_v17 = vpop.xlane.xlu0 %161 }
 0x1a3   :  { %v163_v18 = vmul.f32 0.125, %v162_v17 }
 0x1a5   :  { %v164_v19 = vsub.f32 %v157_v14, %v163_v18 }
 0x1a7   :  { %v165_v20 = vmul.f32 %v589_v13, %v164_v19 }
 0x1a9   :  { %v166_v21 = vmul.f32 %v165_v20, %v165_v20 }
 0x1ab   :  { %167 = vadd.xlane.f32.xlu0 %v166_v21 }
 0x238   :  { %v168_v46 = vpop.xlane.xlu0 %167 }
 0x239   :  { %v169_v47 = vmul.f32 0.125, %v168_v46 }
 0x23b   :  { %v170_v48 = vadd.f32 1e-05, %v169_v47 }
 0x23d   :  { %400 = vrsqrt.f32 %v170_v48 }
 0x247   :  { %v401_v52 = vpop.eup %400 }
 0x248   :  { %v172_v53 = vmul.f32 %v401_v52, %v165_v20 }
 0x24a   :  { %v177_v55 = vmul.f32 %v176_v51, %v172_v53 }
 0x24c   :  { %v182_v56 = vadd.f32 %v181_v54, %v177_v55 }
 0x24e   :  { %v185_v57 = vmul.f32 0.70710677, %v182_v56  ;;  %v183_v59 = vmul.f32 0.5, %v182_v56 }
 0x250   :  { %402 = verf.f32 %v185_v57 }
 0x25a   :  { %v403_v58 = vpop.eup %402 }
 0x25b   :  { %v187_v60 = vadd.f32 1.0, %v403_v58 }
 0x25d   :  { %v188_v61 = vmul.f32 %v187_v60, %v183_v59 }
 0x25f   :  { %362 = vmatmul.mubr.f32.vlgmr.msra.gmra.mrb[0].mxu1 %v188_v61 }
 0x332   :  { %v259_v0 = vpop.f32.mrb[0].mxu1 }
 0x333   :  { %v260_v1 = vadd.f32 %v259_v0, %v192_v63  ;;  %v363_v2 = vpop.f32.mrb[1].mxu1 }
 0x335   :  { %v263_v3 = vmul.f32 %v589_v13, %v260_v1 }
 0x337   :  { %264 = vadd.xlane.f32.xlu1 %v263_v3 }
 0x3c4   :  { %v265_v4 = vpop.xlane.xlu1 %264 }
 0x3c5   :  { %v266_v5 = vmul.f32 0.125, %v265_v4 }
 0x3c7   :  { %v267_v6 = vsub.f32 %v260_v1, %v266_v5 }
 0x3c9   :  { %v268_v8 = vmul.f32 %v589_v13, %v267_v6 }
 0x3cb   :  { %v269_v9 = vmul.f32 %v268_v8, %v268_v8 }
 0x3cd   :  { %270 = vadd.xlane.f32.xlu1 %v269_v9 }
 0x45a   :  { %v271_v11 = vpop.xlane.xlu1 %270 }
 0x45b   :  { %v272_v12 = vmul.f32 0.125, %v271_v11 }
 0x45d   :  { %v273_v14 = vadd.f32 1e-05, %v272_v12 }
 0x45f   :  { %404 = vrsqrt.f32 %v273_v14 }
 0x469   :  { %v405_v7 = vpop.eup %404 }
 0x46a   :  { %v275_v15 = vmul.f32 %v405_v7, %v268_v8 }
 0x46c   :  { %v276_v10 = vmul.f32 %v275_v15, %v176_v51 }
 0x46e   :  { %v277_v16 = vadd.f32 %v276_v10, %v181_v54 }
 0x470   :  { %v279_v17 = vmul.f32 0.70710677, %v277_v16  ;;  %v278_v19 = vmul.f32 0.5, %v277_v16 }
 0x472   :  { %406 = verf.f32 %v279_v17 }
 0x47c   :  { %v407_v18 = vpop.eup %406 }
 0x47d   :  { %v281_v20 = vadd.f32 1.0, %v407_v18 }
 0x47f   :  { %v282_v21 = vmul.f32 %v281_v20, %v278_v19 }
 0x481   :  { %283 = vst [vmem:[#allocation8] sm:$0xff] %v282_v21 }
 0x482   :  { %485 = shalt.err (!%p482_p0)
}
 0x483   :  { %s486_s30 = scalar_lea.hbm %s624_s4, 128 }
 0x484   :  { %p487_p1 = scmp.ne.s32.totalorder %s624_s4, %s486_s30  ;;  %p490_p2 = scmp.lt.u32.totalorder %s486_s30, %s624_s4 }
 0x486   :  { %p492_p3 = pnand %p490_p2, %p487_p1 }
 0x488   :  { %495 = shalt.err (!%p492_p3)
}
 0x489   :  { %293 = dma.vmem_to_hbm [thread:$0]  %s291_s26, 128, %s624_s4, [#allocation4]  }
 0x48a   :  { %500 = dma.done.wait [#allocation4], 128  }
 0x48b   :  { %501 = vsyncadd [#allocation4], 4294967168 }
 0x48c   :  { %297 = vsyncpa [#allocation3], 1 }
 0x48d   :  { %298 = vsyncpa [#allocation6], 1 }
 0x48e   :  { %299 = vsyncpa [#allocation4], 1 }

</bundles_post_ra>
